<compile_context>
chip_gen: v7x
topology: tpu7x:2x2x1
jax: 0.10.0
libtpu: 0.0.40
codegen_flags: <defaults>
</compile_context>

<pallas_src>
import numpy as np
import jax
import jax.numpy as jnp
from jax.experimental import pallas as pl
from jax.experimental.pallas import tpu as pltpu


# ---------------------------------------------------------------- stage 1 ---
def _nudft_kernel(img_ref, cy_ref, ex_ref, kout_ref):
    """Separable type-2 NUDFT for one K tile.

    img : (H, W)        bf16  real image (resident across the grid)
    cy  : (1, W, 2*tk)  bf16  [Re | Im] of exp(-i * ky * y)
    ex  : (1, H, 2*tk)  bf16  [Re | Im] of exp(-i * kx * x) / sqrt(H*W)
    out : (2, tk)       f32   stacked [Re; Im] of the k-space samples
    """
    tk = kout_ref.shape[-1]
    img = img_ref[...]
    # y-axis transform on the MXU: (H, W) @ (W, 2*tk) -> (H, 2*tk), f32 acc.
    a = jnp.dot(img, cy_ref[0], preferred_element_type=jnp.float32)
    ar = a[:, :tk]
    ai = a[:, tk:]
    ex = ex_ref[0]                        # bf16; promoted per-element below
    exr = ex[:, :tk]
    exi = ex[:, tk:]
    # x-axis phase applied elementwise (VPU), then reduce over H (XLU).
    kr = (ar * exr - ai * exi).sum(axis=0, keepdims=True)    # (1, tk) f32
    ki = (ar * exi + ai * exr).sum(axis=0, keepdims=True)    # (1, tk) f32
    kout_ref[...] = jnp.concatenate([kr, ki], axis=0)         # (2, tk)


# ---------------------------------------------------------------- stage 2 ---
def _shifted_ifft_kernel(kr_ref, ki_ref, br_ref, bi_ref, out_ref):
    """sino = Re(fftshift(ifft(ifftshift(kdata, -1), -1), -1)) as (N,M)@(M,M)."""
    out_ref[...] = (
        jnp.dot(kr_ref[...], br_ref[...], preferred_element_type=jnp.float32)
        + jnp.dot(ki_ref[...], bi_ref[...], preferred_element_type=jnp.float32)
    )


# ------------------------------------------------------------------- glue ---
def _round_up(x, m):
    return ((x + m - 1) // m) * m


def _shifted_ifft_matrix(M):
    """W such that fftshift(ifft(ifftshift(x))) == W @ x for length-M x."""
    eye = jnp.eye(M, dtype=jnp.complex64)
    w = jnp.fft.ifftshift(eye, axes=0)
    w = jnp.fft.ifft(w, axis=0)
    w = jnp.fft.fftshift(w, axes=0)
    return w                                              # (M, M) complex


def make_radial_kspace(N, M):
    """Deterministic radial k-space trajectory: N spokes x M samples, (2, N*M)."""
    thetas = jnp.pi * jnp.arange(N, dtype=jnp.float32) / N
    omega = 2.0 * jnp.pi * (jnp.arange(M, dtype=jnp.float32) - M // 2) / M
    kx = omega[None, :] * jnp.cos(thetas)[:, None]
    ky = omega[None, :] * jnp.sin(thetas)[:, None]
    return jnp.stack([kx.reshape(-1), ky.reshape(-1)], axis=0)


def _choose_tile_k(H, W, K, requested, vmem_budget_bytes):
    """Largest 128-multiple K tile that fits the VMEM budget (double-buffered)."""
    # Rough per-k-sample VMEM bytes: double-buffered bf16 cy/ex input blocks
    # (2 * 2*(H+W) * 2B) + f32 MXU result (H*2*4B) + ~one live f32 product
    # per half + double-buffered (2,) f32 output block.
    per_col = 8 * (H + W) + 16 * H + 16
    cap = max(128, (vmem_budget_bytes // per_col) // 128 * 128)
    tk = min(int(requested), cap, _round_up(K, 128))
    tk = max(128, (tk // 128) * 128)
    # Keep >= 2 grid steps when K allows it so the "parallel" K axis can be
    # sharded across v7x's two TensorCores.
    if K > 128 and pl.cdiv(K, tk) < 2:
        tk = max(128, _round_up(pl.cdiv(K, 2), 128))
    return tk


def build_radon_plan(kspace, image_shape, sino_shape, *,
                     tile_k=2048, vmem_budget_bytes=40 << 20):
    """Precompute (and cache across calls) the packed NUDFT factor matrices,
    the shifted-IFFT basis, and the K tiling for a fixed trajectory.

    The cos/sin pass over (H+W) x K elements is comparable in cost to the
    stage-1 kernel itself, so it must not sit on the per-forward path.
    (A v5e-only option is to recompute the ex_* factors in-kernel from a
    (1, tk) kx tile to halve the HBM stream; not done here -- measure first.)
    """
    H, W = image_shape
    N, M = sino_shape
    K = N * M
    assert kspace.shape == (2, K)

    tk = _choose_tile_k(H, W, K, tile_k, vmem_budget_bytes)
    K_pad = _round_up(K, tk)
    nt = K_pad // tk

    kx = jnp.pad(kspace[0].astype(jnp.float32), (0, K_pad - K))
    ky = jnp.pad(kspace[1].astype(jnp.float32), (0, K_pad - K))
    xs = jnp.arange(H, dtype=jnp.float32) - H // 2         # image row coords
    ys = jnp.arange(W, dtype=jnp.float32) - W // 2         # image col coords
    scale = 1.0 / np.sqrt(float(H * W))                    # 'ortho' norm

    cy_r = jnp.cos(ys[:, None] * ky[None, :])              # (W, K_pad)
    cy_i = -jnp.sin(ys[:, None] * ky[None, :])
    ex_r = jnp.cos(xs[:, None] * kx[None, :]) * scale      # (H, K_pad)
    ex_i = -jnp.sin(xs[:, None] * kx[None, :]) * scale

    def _pack(re, im, rows):
        # (rows, K_pad) x2 -> (nt, rows, 2*tk) with [Re | Im] halves per tile.
        re3 = re.reshape(rows, nt, tk).transpose(1, 0, 2)
        im3 = im.reshape(rows, nt, tk).transpose(1, 0, 2)
        return jnp.concatenate([re3, im3], axis=2).astype(jnp.bfloat16)

    cy = _pack(cy_r, cy_i, W)                               # (nt, W, 2*tk)
    ex = _pack(ex_r, ex_i, H)                               # (nt, H, 2*tk)

    w = _shifted_ifft_matrix(M)
    # sino[n, m'] = sum_m kr[n, m]*Re(W)[m', m] - ki[n, m]*Im(W)[m', m]
    br = jnp.real(w).T.astype(jnp.float32)                  # (M, M)
    bi = (-jnp.imag(w)).T.astype(jnp.float32)               # (M, M)

    return dict(cy=cy, ex=ex, br=br, bi=bi, tile_k=tk, K=K, K_pad=K_pad,
                image_shape=(H, W), sino_shape=(N, M))


def radon_forward_pallas(image, plan):
    H, W = plan["image_shape"]
    N, M = plan["sino_shape"]
    K, K_pad, tk = plan["K"], plan["K_pad"], plan["tile_k"]
    nt = K_pad // tk
    assert image.shape == (H, W)

    img_bf16 = image.astype(jnp.bfloat16)                   # (H, W)

    # ---- stage 1: separable NUDFT, K tiled by a "parallel" grid axis ----
    # (H and W are full-dim blocks; for very large images the W contraction
    #  would become a trailing "arbitrary" reduction axis.)
    kflat = pl.pallas_call(
        _nudft_kernel,
        out_shape=jax.ShapeDtypeStruct((2, K_pad), jnp.float32),
        grid_spec=pltpu.PrefetchScalarGridSpec(
            num_scalar_prefetch=0,
            grid=(nt,),
            in_specs=[
                pl.BlockSpec((H, W), lambda j: (0, 0)),             # image (resident)
                pl.BlockSpec((1, W, 2 * tk), lambda j: (j, 0, 0)),  # [Re|Im] exp(-i ky y)
                pl.BlockSpec((1, H, 2 * tk), lambda j: (j, 0, 0)),  # [Re|Im] exp(-i kx x)/sqrt(HW)
            ],
            out_specs=pl.BlockSpec((2, tk), lambda j: (0, j)),
        ),
        compiler_params=pltpu.CompilerParams(
            dimension_semantics=("parallel",),
            vmem_limit_bytes=48 << 20),      # leaves headroom on v7x (64 MiB)
    )(img_bf16, plan["cy"], plan["ex"])

    kr = kflat[0, :K].reshape(N, M)
    ki = kflat[1, :K].reshape(N, M)

    # ---- stage 2: per-angle shifted IFFT (real part) as an (M, M) matmul ----
    # Kept in f32 for accuracy (negligible cost vs stage 1).  At the toy M=16
    # the output uses masked sub-128-lane stores; at realistic M (>=128) it is
    # lane-dense.  N is tiled only when large enough to matter.
    tn = 256 if (N > 256 and N % 256 == 0) else N
    sino = pl.pallas_call(
        _shifted_ifft_kernel,
        out_shape=jax.ShapeDtypeStruct((N, M), jnp.float32),
        grid_spec=pltpu.PrefetchScalarGridSpec(
            num_scalar_prefetch=0,
            grid=(N // tn,),
            in_specs=[
                pl.BlockSpec((tn, M), lambda i: (i, 0)),
                pl.BlockSpec((tn, M), lambda i: (i, 0)),
                pl.BlockSpec((M, M), lambda i: (0, 0)),
                pl.BlockSpec((M, M), lambda i: (0, 0)),
            ],
            out_specs=pl.BlockSpec((tn, M), lambda i: (i, 0)),
        ),
        compiler_params=pltpu.CompilerParams(
            dimension_semantics=("parallel",)),
    )(kr, ki, plan["br"], plan["bi"])

    return sino


def _reference(image, kspace, sino_shape):
    """Pure-JAX f32 reference: exact (non-separable) NUDFT + shifted IFFT."""
    H, W = image.shape
    N, M = sino_shape
    P = H * W
    xs = jnp.arange(H, dtype=jnp.float32) - H // 2
    ys = jnp.arange(W, dtype=jnp.float32) - W // 2
    gx, gy = jnp.meshgrid(xs, ys, indexing="ij")
    grid_xy = jnp.stack([gx.reshape(-1), gy.reshape(-1)], axis=0)   # (2, P)
    phase = grid_xy.T @ kspace                                      # (P, K)
    scale = 1.0 / jnp.sqrt(jnp.float32(P))
    img_flat = image.reshape(1, P).astype(jnp.float32)
    kr = img_flat @ (jnp.cos(phase) * scale)
    ki = img_flat @ (-jnp.sin(phase) * scale)
    kdata = (kr + 1j * ki).reshape(N, M).astype(jnp.complex64)
    out = jnp.fft.ifftshift(kdata, axes=1)
    out = jnp.fft.ifft(out, axis=1).real
    out = jnp.fft.fftshift(out, axes=1)
    return out.astype(jnp.float32)


if __name__ == "__main__":
    key = jax.random.PRNGKey(0)
    H = W = 16                      # image_shape = (16, 16)
    N, M = 8, 16                    # sino_shape  = (8 angles, 16 detector bins)

    image = jax.random.normal(key, (H, W), dtype=jnp.float32)
    kspace = make_radial_kspace(N, M)          # deterministic radial trajectory

    plan = build_radon_plan(kspace, (H, W), (N, M))      # build once, reuse
    sino = radon_forward_pallas(image, plan)
    sino = jax.block_until_ready(sino)

    ref = _reference(image, kspace, (N, M))
    assert sino.shape == (N, M) and sino.dtype == jnp.float32
    # bf16 factor matrices + f32 MXU accumulation keep the error at the few-e-3
    # level; 2e-2 tolerance gives margin over the f32 reference.
    assert np.allclose(np.asarray(sino), np.asarray(ref), atol=2e-2, rtol=2e-2)

    print("KERNEL_OK")
</pallas_src>

<mosaic_0001>
module attributes {stable_mosaic.version = 11 : i64} {
  func.func @_nudft_kernel(%arg0: i32, %arg1: memref<16x16xbf16, #tpu.memory_space<vmem>>, %arg2: memref<1x16x256xbf16, #tpu.memory_space<vmem>>, %arg3: memref<1x16x256xbf16, #tpu.memory_space<vmem>>, %arg4: memref<2x128xf32, #tpu.memory_space<vmem>>) attributes {dimension_semantics = [#tpu.dimension_semantics<parallel>], iteration_bounds = array<i64: 1>, scalar_prefetch = 0 : i64, scratch_operands = 0 : i64, tpu.core_type = #tpu.core_type<tc>, window_params = [{pipeline_mode = #tpu.pipeline_mode<synchronous>, transform_indices = @transform_0, window_bounds = array<i64: 16, 16>}, {transform_indices = @transform_1, window_bounds = array<i64: 1, 16, 256>}, {transform_indices = @transform_2, window_bounds = array<i64: 1, 16, 256>}, {transform_indices = @transform_3, window_bounds = array<i64: 2, 128>}]} {
    %c0 = arith.constant 0 : index
    %c0_0 = arith.constant 0 : index
    %0 = vector.load %arg1[%c0, %c0_0] : memref<16x16xbf16, #tpu.memory_space<vmem>>, vector<16x16xbf16>
    %c0_1 = arith.constant 0 : index
    %c0_2 = arith.constant 0 : index
    %c0_3 = arith.constant 0 : index
    %1 = vector.load %arg2[%c0_1, %c0_2, %c0_3] : memref<1x16x256xbf16, #tpu.memory_space<vmem>>, vector<1x16x256xbf16>
    %2 = vector.shape_cast %1 : vector<1x16x256xbf16> to vector<16x256xbf16>
    %cst = arith.constant dense<0.000000e+00> : vector<16x256xf32>
    %3 = tpu.matmul %0, %2, %cst {dimension_numbers = #tpu.dot_dimension_numbers<[1], [0], [0], [1], [0, 0, 1, 1], [], []>} : vector<16x16xbf16>, vector<16x256xbf16>, vector<16x256xf32> -> vector<16x256xf32>
    %4 = vector.extract_strided_slice %3 {offsets = [0, 0], sizes = [16, 128], strides = [1, 1]} : vector<16x256xf32> to vector<16x128xf32>
    %5 = vector.extract_strided_slice %3 {offsets = [0, 128], sizes = [16, 128], strides = [1, 1]} : vector<16x256xf32> to vector<16x128xf32>
    %c0_4 = arith.constant 0 : index
    %c0_5 = arith.constant 0 : index
    %c0_6 = arith.constant 0 : index
    %6 = vector.load %arg3[%c0_4, %c0_5, %c0_6] : memref<1x16x256xbf16, #tpu.memory_space<vmem>>, vector<1x16x256xbf16>
    %7 = vector.shape_cast %6 : vector<1x16x256xbf16> to vector<16x256xbf16>
    %8 = vector.extract_strided_slice %7 {offsets = [0, 0], sizes = [16, 128], strides = [1, 1]} : vector<16x256xbf16> to vector<16x128xbf16>
    %9 = vector.extract_strided_slice %7 {offsets = [0, 128], sizes = [16, 128], strides = [1, 1]} : vector<16x256xbf16> to vector<16x128xbf16>
    %10 = arith.extf %8 : vector<16x128xbf16> to vector<16x128xf32>
    %11 = arith.mulf %4, %10 : vector<16x128xf32>
    %12 = arith.extf %9 : vector<16x128xbf16> to vector<16x128xf32>
    %13 = arith.mulf %5, %12 : vector<16x128xf32>
    %14 = arith.subf %11, %13 : vector<16x128xf32>
    %cst_7 = arith.constant dense<0.000000e+00> : vector<128xf32>
    %15 = vector.multi_reduction <add>, %14, %cst_7 [0] : vector<16x128xf32> to vector<128xf32>
    %16 = vector.shape_cast %15 : vector<128xf32> to vector<1x128xf32>
    %17 = arith.extf %9 : vector<16x128xbf16> to vector<16x128xf32>
    %18 = arith.mulf %4, %17 : vector<16x128xf32>
    %19 = arith.extf %8 : vector<16x128xbf16> to vector<16x128xf32>
    %20 = arith.mulf %5, %19 : vector<16x128xf32>
    %21 = arith.addf %18, %20 : vector<16x128xf32>
    %cst_8 = arith.constant dense<0.000000e+00> : vector<128xf32>
    %22 = vector.multi_reduction <add>, %21, %cst_8 [0] : vector<16x128xf32> to vector<128xf32>
    %23 = vector.shape_cast %22 : vector<128xf32> to vector<1x128xf32>
    %24 = tpu.concatenate %16, %23 in 0 : vector<1x128xf32>, vector<1x128xf32> -> vector<2x128xf32>
    %c0_9 = arith.constant 0 : index
    %c0_10 = arith.constant 0 : index
    %25 = vector.load %arg4[%c0_9, %c0_10] : memref<2x128xf32, #tpu.memory_space<vmem>>, vector<2x128xf32>
    tpu.vector_store %arg4[%c0_9, %c0_10], %24 {strides = array<i32>} : memref<2x128xf32, #tpu.memory_space<vmem>>, vector<2x128xf32>,
    return
  }
  func.func @transform_0(%arg0: i32) -> (i32, i32) {
    %c0_i32 = arith.constant 0 : i32
    %c0_i32_0 = arith.constant 0 : i32
    %c0_i32_1 = arith.constant 0 : i32
    return %c0_i32, %c0_i32_0 : i32, i32
  }
  func.func @transform_1(%arg0: i32) -> (i32, i32, i32) {
    %c0_i32 = arith.constant 0 : i32
    %c0_i32_0 = arith.constant 0 : i32
    %c0_i32_1 = arith.constant 0 : i32
    return %arg0, %c0_i32, %c0_i32_0 : i32, i32, i32
  }
  func.func @transform_2(%arg0: i32) -> (i32, i32, i32) {
    %c0_i32 = arith.constant 0 : i32
    %c0_i32_0 = arith.constant 0 : i32
    %c0_i32_1 = arith.constant 0 : i32
    return %arg0, %c0_i32, %c0_i32_0 : i32, i32, i32
  }
  func.func @transform_3(%arg0: i32) -> (i32, i32) {
    %c0_i32 = arith.constant 0 : i32
    %c0_i32_0 = arith.constant 0 : i32
    return %c0_i32, %arg0 : i32, i32
  }
}

</mosaic_0001>

<bundles_post_ra>
// kernel: tpu_custom_call.1
= control target key start
LH: loop header
LB: loop body
LE: loop exit
PB: predicated region body
PF: predicated region fallthrough
CT: control target
= control target key end

     0   :  { %8 = vsyncpa [#allocation3], 0  ;;  %s374_s0 = inlined_call_operand.hbm [shape: bf16[16,16], index: 0, kind: input, shape index: {}]   ;;  %s375_s1 = inlined_call_operand.hbm [shape: bf16[1,16,256], index: 1, kind: input, shape index: {}]   ;;  %s376_s2 = inlined_call_operand.hbm [shape: bf16[1,16,256], index: 2, kind: input, shape index: {}]   ;;  %s377_s3 = inlined_call_operand.hbm [shape: f32[2,128], index: 3, kind: output, shape index: {}]  }
   0x1   :  { %9 = vsyncpa [#allocation6], 0 }
   0x2   :  { %10 = vsyncpa [#allocation4], 0  ;;  %s291_s12 = smov [#allocation5]   ;;  %s197_s16 = scalar_lea.hbm %s375_s1, 256 }
   0x3   :  { %s28_s13 = sshll.u32 %s291_s12, 4  ;;  %p198_p0 = scmp.ne.s32.totalorder %s375_s1, %s197_s16  ;;  %s29_s13 = int_to_ptr.vmem [resolvable:$true] %s28_s13 }
   0x4   :  { %p201_p1 = scmp.lt.u32.totalorder %s197_s16, %s375_s1 }
   0x6   :  { %p203_p2 = pnand %p201_p1, %p198_p0 }
   0x8   :  { %206 = shalt.err (!%p203_p2)
}
   0x9   :  { %s207_s21 = scalar_lea.vmem %s29_s13, 256  ;;  %p212_p4 = scmp.lt.s32.totalorder %s29_s13, %s29_s13 }
   0xa   :  { %p208_p3 = scmp.ne.s32.totalorder %s29_s13, %s207_s21  ;;  %p213_p5 = scmp.lt.s32.totalorder %s207_s21, %s207_s21 }
   0xc   :  { %p214_p6 = por %p213_p5, %p212_p4 }
   0xe   :  { %p215_p7 = pnand %p214_p6, %p208_p3 }
  0x10   :  { %218 = shalt.err (!%p215_p7)
}
  0x11   :  { %s292_s22 = smov 128   ;;  %s293_s23 = smov 8  }
  0x12   :  { %34 = dma.hbm_to_vmem [thread:$0]  %s375_s1, 256, %s29_s13, [#allocation6], %s292_s22, %s292_s22, %s293_s23  }
  0x13   :  { %s294_s26 = smov [#allocation2]   ;;  %s219_s30 = scalar_lea.hbm %s374_s0, 128 }
  0x14   :  { %s16_s27 = sshll.u32 %s294_s26, 4  ;;  %p220_p8 = scmp.ne.s32.totalorder %s374_s0, %s219_s30  ;;  %s17_s27 = int_to_ptr.vmem [resolvable:$true] %s16_s27 }
  0x15   :  { %p223_p9 = scmp.lt.u32.totalorder %s219_s30, %s374_s0 }
  0x17   :  { %p225_p10 = pnand %p223_p9, %p220_p8 }
  0x19   :  { %228 = shalt.err (!%p225_p10)
}
  0x1a   :  { %s229_s8 = scalar_lea.vmem %s17_s27, 128  ;;  %p234_p12 = scmp.lt.s32.totalorder %s17_s27, %s17_s27 }
  0x1b   :  { %p230_p11 = scmp.ne.s32.totalorder %s17_s27, %s229_s8  ;;  %p235_p13 = scmp.lt.s32.totalorder %s229_s8, %s229_s8 }
  0x1d   :  { %p236_p0 = por %p235_p13, %p234_p12 }
  0x1f   :  { %p237_p1 = pnand %p236_p0, %p230_p11 }
  0x21   :  { %240 = shalt.err (!%p237_p1)
}
  0x22   :  { %s295_s1 = smov 64   ;;  %s296_s9 = smov 4  }
  0x23   :  { %22 = dma.hbm_to_vmem [thread:$0]  %s374_s0, 128, %s17_s27, [#allocation3], %s295_s1, %s295_s1, %s296_s9  }
  0x24   :  { %s297_s12 = smov [#allocation7]   ;;  %s241_s16 = scalar_lea.hbm %s376_s2, 256 }
  0x25   :  { %s40_s13 = sshll.u32 %s297_s12, 4  ;;  %p242_p2 = scmp.ne.s32.totalorder %s376_s2, %s241_s16  ;;  %s41_s13 = int_to_ptr.vmem [resolvable:$true] %s40_s13 }
  0x26   :  { %p245_p3 = scmp.lt.u32.totalorder %s241_s16, %s376_s2 }
  0x28   :  { %p247_p4 = pnand %p245_p3, %p242_p2 }
  0x2a   :  { %250 = shalt.err (!%p247_p4)
}
  0x2b   :  { %s251_s21 = scalar_lea.vmem %s41_s13, 256  ;;  %p256_p6 = scmp.lt.s32.totalorder %s41_s13, %s41_s13 }
  0x2c   :  { %p252_p5 = scmp.ne.s32.totalorder %s41_s13, %s251_s21  ;;  %p257_p7 = scmp.lt.s32.totalorder %s251_s21, %s251_s21 }
  0x2e   :  { %p258_p8 = por %p257_p7, %p256_p6 }
  0x30   :  { %p259_p9 = pnand %p258_p8, %p252_p5 }
  0x32   :  { %262 = shalt.err (!%p259_p9)
}
  0x33   :  { %46 = dma.hbm_to_vmem [thread:$0]  %s376_s2, 256, %s41_s13, [#allocation6], %s292_s22, %s292_s22, %s293_s23  }
  0x34   :  { %285 = dma.done.wait [#allocation3], 128  }
  0x35   :  { %286 = vsyncadd [#allocation3], 4294967168 }
  0x36   :  { %287 = dma.done.wait [#allocation6], 512  }
  0x37   :  { %288 = vsyncadd [#allocation6], 4294966784  ;;  %v298_v0 = vmov 0   ;;  %v193_v1 = vld [vmem:[#allocation5 + $0x4] ss:$8 sps:$4 sm:$0xff]   ;;  %v196_v3 = vld [vmem:[#allocation2] sm:$0xff]  }
  0x38   :  { %112 = vmatprep.mubr.bf16.mxu0 %v298_v0  ;;  %v195_v2 = vld [vmem:[#allocation5] ss:$8 sps:$4 sm:$0xff]   ;;  %80 = vmatprep.subr.bf16.mxu0 %v193_v1  ;;  %vm76_vm0 = vcmask 130048   ;;  %v123_v4 = vld [vmem:[#allocation7] sm:$0xff]  ;;  %v124_v5 = vld [vmem:[#allocation7 + $0x8] sm:$0xff]  ;;  %s299_s2 = smov [#allocation8]  }
  0x39   :  { %81 = vmatpush1.bf16.msra.mxu0 %v195_v2  ;;  %v131_v6 = vrot.slane %v123_v4, 4  ;;  %v132_v7 = vrot.slane %v124_v5, 4  ;;  %v125_v8 = vunpack.c.l.bf16 %v123_v4  ;;  %v126_v10 = vunpack.c.l.bf16 %v124_v5  ;;  %s170_s22 = sshll.u32 %s299_s2, 4  ;;  %s171_s22 = int_to_ptr.vmem [resolvable:$true] %s170_s22 }
  0x3a   :  { %vm161_vm1 = vcmask 1040384   ;;  %s263_s23 = scalar_lea.vmem %s171_s22, 32  ;;  %p268_p11 = scmp.lt.s32.totalorder %s171_s22, %s171_s22 }
  0x3b   :  { %v135_v9 = vunpack.c.l.bf16 %v131_v6  ;;  %v136_v11 = vunpack.c.l.bf16 %v132_v7  ;;  %p264_p10 = scmp.ne.s32.totalorder %s171_s22, %s263_s23  ;;  %p269_p12 = scmp.lt.s32.totalorder %s263_s23, %s263_s23 }
  0x3c   :  { %183 = vmatmul.mubr.msk.bf16.vlgmr.msra.gmra.mrb[0].mxu0 %vm76_vm0, %v196_v3 }
  0x3d   :  { %p270_p13 = por %p269_p12, %p268_p11 }
  0x3f   :  { %p271_p0 = pnand %p270_p13, %p264_p10 }
 0x10f   :  { %v114_v12 = vpop.f32.mrb[0].mxu0 }
 0x110   :  { %v127_v13 = vmul.f32 %v125_v8, %v114_v12  ;;  %v148_v14 = vmul.f32 %v135_v9, %v114_v12  ;;  %v116_v15 = vpop.f32.mrb[1].mxu0 }
 0x111   :  { %v137_v16 = vmul.f32 %v135_v9, %v116_v15  ;;  %v150_v17 = vmul.f32 %v125_v8, %v116_v15  ;;  %v118_v18 = vpop.f32.mrb[2].mxu0 }
 0x112   :  { %v128_v19 = vmul.f32 %v126_v10, %v118_v18  ;;  %v149_v20 = vmul.f32 %v136_v11, %v118_v18  ;;  %v120_v21 = vpop.f32.mrb[3].mxu0 }
 0x113   :  { %v139_v22 = vsub.f32 %v127_v13, %v137_v16  ;;  %v152_v23 = vadd.f32 %v150_v17, %v148_v14  ;;  %v138_v24 = vmul.f32 %v136_v11, %v120_v21  ;;  %v151_v25 = vmul.f32 %v126_v10, %v120_v21 }
 0x115   :  { %v140_v26 = vsub.f32 %v128_v19, %v138_v24  ;;  %v153_v27 = vadd.f32 %v151_v25, %v149_v20 }
 0x117   :  { %v141_v28 = vadd.f32 %v140_v26, %v139_v22  ;;  %v154_v29 = vadd.f32 %v153_v27, %v152_v23 }
 0x119   :  { %v142_v30 = vrot.slane %v141_v28, 4  ;;  %v155_v31 = vrot.slane %v154_v29, 4 }
 0x11b   :  { %v143_v32 = vadd.f32 %v142_v30, %v141_v28  ;;  %v156_v33 = vadd.f32 %v155_v31, %v154_v29 }
 0x11d   :  { %v144_v34 = vrot.slane %v143_v32, 2  ;;  %v157_v35 = vrot.slane %v156_v33, 2 }
 0x11f   :  { %v145_v36 = vadd.f32 %v144_v34, %v143_v32  ;;  %v158_v37 = vadd.f32 %v157_v35, %v156_v33 }
 0x121   :  { %v146_v38 = vrot.slane %v145_v36, 1  ;;  %v159_v39 = vrot.slane %v158_v37, 1 }
 0x123   :  { %v147_v40 = vadd.f32 %v146_v38, %v145_v36  ;;  %v160_v41 = vadd.f32 %v159_v39, %v158_v37 }
 0x125   :  { %v162_v42 = vsel %vm161_vm1, %v147_v40, %v160_v41 }
 0x126   :  { %163 = vst [vmem:[#allocation8] sm:$0x3] %v162_v42 }
 0x127   :  { %274 = shalt.err (!%p271_p0)
}
 0x128   :  { %s275_s27 = scalar_lea.hbm %s377_s3, 32 }
 0x129   :  { %p276_p1 = scmp.ne.s32.totalorder %s377_s3, %s275_s27  ;;  %p279_p2 = scmp.lt.u32.totalorder %s275_s27, %s377_s3 }
 0x12b   :  { %p281_p3 = pnand %p279_p2, %p276_p1 }
 0x12d   :  { %284 = shalt.err (!%p281_p3)
}
 0x12e   :  { %173 = dma.vmem_to_hbm [thread:$0]  %s171_s22, 32, %s377_s3, [#allocation4]  }
 0x12f   :  { %289 = dma.done.wait [#allocation4], 32  }
 0x130   :  { %290 = vsyncadd [#allocation4], 4294967264 }
 0x131   :  { %177 = vsyncpa [#allocation3], 1 }
 0x132   :  { %178 = vsyncpa [#allocation6], 1 }
 0x133   :  { %179 = vsyncpa [#allocation4], 1 }

</bundles_post_ra>
